<compile_context>
chip_gen: v7x
topology: tpu7x:2x2x1
jax: 0.10.0
libtpu: 0.0.40
codegen_flags: <defaults>
</compile_context>

<pallas_src>
import jax
import jax.numpy as jnp
from jax.experimental import pallas as pl
from jax.experimental.pallas import tpu as pltpu

LAYER_1_NODES = 50
LAYER_2_NODES = 100
LAYER_3_NODES = 50

_LANE = 128             # TPU lane width
_DEFAULT_TILE_B = 2048  # rows per grid step (multiple of 16)


def _round_up(x, m):
    return (x + m - 1) // m * m


def _mlp_kernel(x_ref, w1_ref, b1_ref, w2_ref, b2_ref, w3_ref, b3_ref, o_ref):
    """Fused 3-layer MLP on one (TILE_B, d_in) batch tile.

    Matmuls accumulate in f32 on the MXU; ReLU'd activations are cast back to
    the operand compute dtype (bf16 or f32) before the next matmul. Biases are
    (1, 128) f32 rows broadcast-added on the VPU (free under MXU/DMA slack).
    """
    compute_dtype = w1_ref.dtype
    x = x_ref[...]
    h = jnp.dot(x, w1_ref[...], preferred_element_type=jnp.float32) + b1_ref[...]
    h = jnp.maximum(h, 0.0).astype(compute_dtype)
    h = jnp.dot(h, w2_ref[...], preferred_element_type=jnp.float32) + b2_ref[...]
    h = jnp.maximum(h, 0.0).astype(compute_dtype)
    h = jnp.dot(h, w3_ref[...], preferred_element_type=jnp.float32) + b3_ref[...]
    h = jnp.maximum(h, 0.0)
    o_ref[...] = h.astype(o_ref.dtype)


def neural_net_forward(x, params, *, compute_dtype=jnp.bfloat16,
                       out_dtype=None, tile_b=_DEFAULT_TILE_B, trim=True):
    """x: (B, input_size) f32. params: dict of pre-transposed weights/biases.

    Returns (B, LAYER_3_NODES) in `out_dtype` (defaults to `compute_dtype`),
    matching the PyTorch forward(). Set trim=False to get the lane-dense
    (B_padded, 128) slab and avoid the extra column-slice copy downstream.
    """
    if out_dtype is None:
        out_dtype = compute_dtype

    w1, b1 = params["w1"], params["b1"]
    w2, b2 = params["w2"], params["b2"]
    w3, b3 = params["w3"], params["b3"]

    B, d_in = x.shape
    out_dim = w3.shape[1]

    # ---- lane-dense padding of HIDDEN dims only (x stays native width) -----
    h1_p = _round_up(w1.shape[1], _LANE)
    h2_p = _round_up(w2.shape[1], _LANE)
    h3_p = _round_up(out_dim, _LANE)

    def pad2(a, rows, cols):
        return jnp.pad(a, ((0, rows - a.shape[0]), (0, cols - a.shape[1])))

    # Weights: zero-pad output columns (and input rows for w2/w3) and cast to
    # the MXU operand dtype. Zero bias/weight padding + ReLU(0)=0 keeps the
    # padded hidden columns exactly zero through every layer.
    w1p = pad2(w1, d_in, h1_p).astype(compute_dtype)
    w2p = pad2(w2, h1_p, h2_p).astype(compute_dtype)
    w3p = pad2(w3, h2_p, h3_p).astype(compute_dtype)
    # Biases stay f32 (added to the f32 accumulator inside the kernel).
    b1p = pad2(b1, 1, h1_p)
    b2p = pad2(b2, 1, h2_p)
    b3p = pad2(b3, 1, h3_p)

    # ---- batch tiling -------------------------------------------------------
    tile_b = max(16, _round_up(int(tile_b), 16))     # robustness: multiple of 16
    b_pad16 = _round_up(max(B, 1), 16)
    tb = min(tile_b, b_pad16)
    if b_pad16 >= 32:
        # Prefer >= 2 grid steps so the "parallel" batch axis can actually be
        # sharded across both TensorCores on v7x (no effect on v5e/v6e).
        tb = min(tb, max(_round_up((b_pad16 + 1) // 2, 16), 16))
    B_p = _round_up(B, tb)

    # Cast BEFORE padding (only batch-row padding remains; no feature pad).
    xc = x.astype(compute_dtype)
    xp = xc if B_p == B else jnp.pad(xc, ((0, B_p - B), (0, 0)))

    grid = (B_p // tb,)
    const = lambda i: (0, 0)  # weights/biases stay VMEM-resident across steps

    out_padded = pl.pallas_call(
        _mlp_kernel,
        out_shape=jax.ShapeDtypeStruct((B_p, h3_p), out_dtype),
        grid=grid,
        in_specs=[
            # x: tiled over batch; last dim == full array dim (legal, <128).
            pl.BlockSpec((tb, d_in), lambda i: (i, 0)),
            pl.BlockSpec((d_in, h1_p), const),
            pl.BlockSpec((1, h1_p), const),
            pl.BlockSpec((h1_p, h2_p), const),
            pl.BlockSpec((1, h2_p), const),
            pl.BlockSpec((h2_p, h3_p), const),
            pl.BlockSpec((1, h3_p), const),
        ],
        out_specs=pl.BlockSpec((tb, h3_p), lambda i: (i, 0)),
        compiler_params=pltpu.CompilerParams(
            dimension_semantics=("parallel",)),  # shard batch across TCs on v7x
    )(xp, w1p, b1p, w2p, b2p, w3p, b3p)

    if not trim:
        return out_padded  # lane-dense (B_p, 128) slab, no extra copy
    # Slice away batch padding and padded output columns (128 -> 50). Note this
    # column slice costs one extra HBM pass; use trim=False to avoid it.
    return out_padded[:B, :out_dim]


def init_params(key, input_size, output_size):
    """Deterministic init mimicking nn.Linear's U(-1/sqrt(fan_in), 1/sqrt(fan_in)).

    Weights are stored already transposed: (in_features, out_features).
    Biases are stored as (1, out_features) so they broadcast cleanly on TPU.
    """
    dims = [input_size, LAYER_1_NODES, LAYER_2_NODES, LAYER_3_NODES, output_size]
    params = {}
    keys = jax.random.split(key, 8)
    for i in range(4):
        fan_in, fan_out = dims[i], dims[i + 1]
        bound = 1.0 / jnp.sqrt(jnp.float32(fan_in))
        w = jax.random.uniform(keys[2 * i], (fan_in, fan_out), jnp.float32,
                               minval=-bound, maxval=bound)
        b = jax.random.uniform(keys[2 * i + 1], (1, fan_out), jnp.float32,
                               minval=-bound, maxval=bound)
        params[f"w{i + 1}"] = w
        params[f"b{i + 1}"] = b
    # Note: w4/b4 (fc4) are initialized for parity with __init__ but unused in
    # forward(), exactly as in the PyTorch module.
    return params


def reference_forward(x, params):
    h = jnp.maximum(x @ params["w1"] + params["b1"], 0.0)
    h = jnp.maximum(h @ params["w2"] + params["b2"], 0.0)
    h = jnp.maximum(h @ params["w3"] + params["b3"], 0.0)
    return h


if __name__ == "__main__":
    key = jax.random.PRNGKey(0)
    k_x, k_xb, k_p = jax.random.split(key, 3)

    batch = 8
    input_size = 32
    output_size = 10  # only used for the unused fc4, kept for shape parity

    x = jax.random.normal(k_x, (batch, input_size), jnp.float32)
    params = init_params(k_p, input_size, output_size)

    # 1) f32-compute / f32-output path (close-to-bit-faithful check vs. the
    #    f32 reference; tiny accumulation-order differences only).
    out_f32 = jax.block_until_ready(
        neural_net_forward(x, params, compute_dtype=jnp.float32,
                           out_dtype=jnp.float32))
    ref = reference_forward(x, params)
    assert out_f32.shape == (batch, LAYER_3_NODES), out_f32.shape
    assert jnp.allclose(out_f32, ref, atol=1e-5, rtol=1e-5), "f32 mismatch"

    # 2) Default bf16-operand / f32-accumulate / bf16-output path on a larger
    #    batch (exercises the batch grid + parallel dimension semantics).
    big_batch = 512
    xb = jax.random.normal(k_xb, (big_batch, input_size), jnp.float32)
    out_bf16 = jax.block_until_ready(neural_net_forward(xb, params))
    ref_b = reference_forward(xb, params)
    assert out_bf16.shape == (big_batch, LAYER_3_NODES), out_bf16.shape
    assert jnp.allclose(out_bf16.astype(jnp.float32), ref_b,
                        atol=5e-2, rtol=5e-2), "bf16 mismatch"

    print("KERNEL_OK")
</pallas_src>

<mosaic_0001>
module attributes {stable_mosaic.version = 11 : i64} {
  func.func @_mlp_kernel(%arg0: i32, %arg1: memref<16x32xf32, #tpu.memory_space<vmem>>, %arg2: memref<32x128xf32, #tpu.memory_space<vmem>>, %arg3: memref<1x128xf32, #tpu.memory_space<vmem>>, %arg4: memref<128x128xf32, #tpu.memory_space<vmem>>, %arg5: memref<1x128xf32, #tpu.memory_space<vmem>>, %arg6: memref<128x128xf32, #tpu.memory_space<vmem>>, %arg7: memref<1x128xf32, #tpu.memory_space<vmem>>, %arg8: memref<16x128xf32, #tpu.memory_space<vmem>>) attributes {dimension_semantics = [#tpu.dimension_semantics<parallel>], iteration_bounds = array<i64: 1>, scalar_prefetch = 0 : i64, scratch_operands = 0 : i64, tpu.core_type = #tpu.core_type<tc>, window_params = [{transform_indices = @transform_0, window_bounds = array<i64: 16, 32>}, {pipeline_mode = #tpu.pipeline_mode<synchronous>, transform_indices = @transform_1, window_bounds = array<i64: 32, 128>}, {pipeline_mode = #tpu.pipeline_mode<synchronous>, transform_indices = @transform_2, window_bounds = array<i64: 1, 128>}, {pipeline_mode = #tpu.pipeline_mode<synchronous>, transform_indices = @transform_3, window_bounds = array<i64: 128, 128>}, {pipeline_mode = #tpu.pipeline_mode<synchronous>, transform_indices = @transform_4, window_bounds = array<i64: 1, 128>}, {pipeline_mode = #tpu.pipeline_mode<synchronous>, transform_indices = @transform_5, window_bounds = array<i64: 128, 128>}, {pipeline_mode = #tpu.pipeline_mode<synchronous>, transform_indices = @transform_6, window_bounds = array<i64: 1, 128>}, {transform_indices = @transform_7, window_bounds = array<i64: 16, 128>}]} {
    %c0 = arith.constant 0 : index
    %c0_0 = arith.constant 0 : index
    %0 = vector.load %arg1[%c0, %c0_0] : memref<16x32xf32, #tpu.memory_space<vmem>>, vector<16x32xf32>
    %c0_1 = arith.constant 0 : index
    %c0_2 = arith.constant 0 : index
    %1 = vector.load %arg2[%c0_1, %c0_2] : memref<32x128xf32, #tpu.memory_space<vmem>>, vector<32x128xf32>
    %cst = arith.constant dense<0.000000e+00> : vector<16x128xf32>
    %2 = tpu.matmul %0, %1, %cst {dimension_numbers = #tpu.dot_dimension_numbers<[1], [0], [0], [1], [0, 0, 1, 1], [], []>} : vector<16x32xf32>, vector<32x128xf32>, vector<16x128xf32> -> vector<16x128xf32>
    %c0_3 = arith.constant 0 : index
    %c0_4 = arith.constant 0 : index
    %3 = vector.load %arg3[%c0_3, %c0_4] : memref<1x128xf32, #tpu.memory_space<vmem>>, vector<1x128xf32>
    %4 = vector.broadcast %3 : vector<1x128xf32> to vector<16x128xf32>
    %5 = arith.addf %2, %4 : vector<16x128xf32>
    %cst_5 = arith.constant 0.000000e+00 : f32
    %6 = vector.broadcast %cst_5 : f32 to vector<16x128xf32>
    %7 = arith.maximumf %5, %6 : vector<16x128xf32>
    %c0_6 = arith.constant 0 : index
    %c0_7 = arith.constant 0 : index
    %8 = vector.load %arg4[%c0_6, %c0_7] : memref<128x128xf32, #tpu.memory_space<vmem>>, vector<128x128xf32>
    %cst_8 = arith.constant dense<0.000000e+00> : vector<16x128xf32>
    %9 = tpu.matmul %7, %8, %cst_8 {dimension_numbers = #tpu.dot_dimension_numbers<[1], [0], [0], [1], [0, 0, 1, 1], [], []>} : vector<16x128xf32>, vector<128x128xf32>, vector<16x128xf32> -> vector<16x128xf32>
    %c0_9 = arith.constant 0 : index
    %c0_10 = arith.constant 0 : index
    %10 = vector.load %arg5[%c0_9, %c0_10] : memref<1x128xf32, #tpu.memory_space<vmem>>, vector<1x128xf32>
    %11 = vector.broadcast %10 : vector<1x128xf32> to vector<16x128xf32>
    %12 = arith.addf %9, %11 : vector<16x128xf32>
    %cst_11 = arith.constant 0.000000e+00 : f32
    %13 = vector.broadcast %cst_11 : f32 to vector<16x128xf32>
    %14 = arith.maximumf %12, %13 : vector<16x128xf32>
    %c0_12 = arith.constant 0 : index
    %c0_13 = arith.constant 0 : index
    %15 = vector.load %arg6[%c0_12, %c0_13] : memref<128x128xf32, #tpu.memory_space<vmem>>, vector<128x128xf32>
    %cst_14 = arith.constant dense<0.000000e+00> : vector<16x128xf32>
    %16 = tpu.matmul %14, %15, %cst_14 {dimension_numbers = #tpu.dot_dimension_numbers<[1], [0], [0], [1], [0, 0, 1, 1], [], []>} : vector<16x128xf32>, vector<128x128xf32>, vector<16x128xf32> -> vector<16x128xf32>
    %c0_15 = arith.constant 0 : index
    %c0_16 = arith.constant 0 : index
    %17 = vector.load %arg7[%c0_15, %c0_16] : memref<1x128xf32, #tpu.memory_space<vmem>>, vector<1x128xf32>
    %18 = vector.broadcast %17 : vector<1x128xf32> to vector<16x128xf32>
    %19 = arith.addf %16, %18 : vector<16x128xf32>
    %cst_17 = arith.constant 0.000000e+00 : f32
    %20 = vector.broadcast %cst_17 : f32 to vector<16x128xf32>
    %21 = arith.maximumf %19, %20 : vector<16x128xf32>
    %c0_18 = arith.constant 0 : index
    %c0_19 = arith.constant 0 : index
    %22 = vector.load %arg8[%c0_18, %c0_19] : memref<16x128xf32, #tpu.memory_space<vmem>>, vector<16x128xf32>
    tpu.vector_store %arg8[%c0_18, %c0_19], %21 {strides = array<i32>} : memref<16x128xf32, #tpu.memory_space<vmem>>, vector<16x128xf32>,
    return
  }
  func.func @transform_0(%arg0: i32) -> (i32, i32) {
    %c0_i32 = arith.constant 0 : i32
    %c0_i32_0 = arith.constant 0 : i32
    return %arg0, %c0_i32 : i32, i32
  }
  func.func @transform_1(%arg0: i32) -> (i32, i32) {
    %c0_i32 = arith.constant 0 : i32
    %c0_i32_0 = arith.constant 0 : i32
    %c0_i32_1 = arith.constant 0 : i32
    return %c0_i32, %c0_i32_0 : i32, i32
  }
  func.func @transform_2(%arg0: i32) -> (i32, i32) {
    %c0_i32 = arith.constant 0 : i32
    %c0_i32_0 = arith.constant 0 : i32
    %c0_i32_1 = arith.constant 0 : i32
    return %c0_i32, %c0_i32_0 : i32, i32
  }
  func.func @transform_3(%arg0: i32) -> (i32, i32) {
    %c0_i32 = arith.constant 0 : i32
    %c0_i32_0 = arith.constant 0 : i32
    %c0_i32_1 = arith.constant 0 : i32
    return %c0_i32, %c0_i32_0 : i32, i32
  }
  func.func @transform_4(%arg0: i32) -> (i32, i32) {
    %c0_i32 = arith.constant 0 : i32
    %c0_i32_0 = arith.constant 0 : i32
    %c0_i32_1 = arith.constant 0 : i32
    return %c0_i32, %c0_i32_0 : i32, i32
  }
  func.func @transform_5(%arg0: i32) -> (i32, i32) {
    %c0_i32 = arith.constant 0 : i32
    %c0_i32_0 = arith.constant 0 : i32
    %c0_i32_1 = arith.constant 0 : i32
    return %c0_i32, %c0_i32_0 : i32, i32
  }
  func.func @transform_6(%arg0: i32) -> (i32, i32) {
    %c0_i32 = arith.constant 0 : i32
    %c0_i32_0 = arith.constant 0 : i32
    %c0_i32_1 = arith.constant 0 : i32
    return %c0_i32, %c0_i32_0 : i32, i32
  }
  func.func @transform_7(%arg0: i32) -> (i32, i32) {
    %c0_i32 = arith.constant 0 : i32
    %c0_i32_0 = arith.constant 0 : i32
    return %arg0, %c0_i32 : i32, i32
  }
}

</mosaic_0001>

<bundles_post_ra>
// kernel: tpu_custom_call.1
= control target key start
LH: loop header
LB: loop body
LE: loop exit
PB: predicated region body
PF: predicated region fallthrough
CT: control target
= control target key end

     0   :  { %12 = vsyncpa [#allocation3], 0  ;;  %s872_s0 = inlined_call_operand.hbm [shape: f32[16,32], index: 0, kind: input, shape index: {}]   ;;  %s873_s1 = inlined_call_operand.hbm [shape: f32[32,128], index: 1, kind: input, shape index: {}]   ;;  %s874_s2 = inlined_call_operand.vmem [shape: f32[1,128], index: 2, kind: input, shape index: {}]   ;;  %s875_s3 = inlined_call_operand.hbm [shape: f32[128,128], index: 3, kind: input, shape index: {}]   ;;  %s876_s4 = inlined_call_operand.vmem [shape: f32[1,128], index: 4, kind: input, shape index: {}]   ;;  %s877_s5 = inlined_call_operand.hbm [shape: f32[128,128], index: 5, kind: input, shape index: {}]   ;;  %s878_s6 = inlined_call_operand.vmem [shape: f32[1,128], index: 6, kind: input, shape index: {}]   ;;  %s879_s7 = inlined_call_operand.hbm [shape: f32[16,128], index: 7, kind: output, shape index: {}]  }
   0x1   :  { %13 = vsyncpa [#allocation6], 0 }
   0x2   :  { %14 = vsyncpa [#allocation9], 0 }
   0x3   :  { %15 = vsyncpa [#allocation4], 0  ;;  %s725_s24 = smov [#allocation5]   ;;  %s726_s26 = smov [#allocation2]  }
   0x4   :  { %s33_s25 = sshll.u32 %s725_s24, 4  ;;  %s21_s27 = sshll.u32 %s726_s26, 4  ;;  %s34_s25 = int_to_ptr.vmem [resolvable:$true] %s33_s25  ;;  %s772_s27 = int_to_ptr.vmem [resolvable:$true] %s21_s27 }
   0x5   :  { %s607_s30 = scalar_lea.hbm %s873_s1, 512 }
   0x6   :  { %p608_p0 = scmp.ne.s32.totalorder %s873_s1, %s607_s30  ;;  %p611_p1 = scmp.lt.u32.totalorder %s607_s30, %s873_s1 }
   0x8   :  { %p613_p2 = pnand %p611_p1, %p608_p0 }
   0xa   :  { %616 = shalt.err (!%p613_p2)
}
   0xb   :  { %s617_s12 = scalar_lea.vmem %s34_s25, 512  ;;  %p622_p4 = scmp.lt.s32.totalorder %s34_s25, %s34_s25 }
   0xc   :  { %p618_p3 = scmp.ne.s32.totalorder %s34_s25, %s617_s12  ;;  %p623_p5 = scmp.lt.s32.totalorder %s617_s12, %s617_s12 }
   0xe   :  { %p624_p6 = por %p623_p5, %p622_p4 }
  0x10   :  { %p625_p7 = pnand %p624_p6, %p618_p3 }
  0x12   :  { %628 = shalt.err (!%p625_p7)
}
  0x13   :  { %s727_s13 = smov 128   ;;  %s728_s14 = smov 8  }
  0x14   :  { %39 = dma.hbm_to_vmem [thread:$0]  %s873_s1, 512, %s34_s25, [#allocation6], %s727_s13, %s727_s13, %s728_s14  }
  0x15   :  { %s629_s19 = scalar_lea.hbm %s872_s0, 256 }
  0x16   :  { %p630_p8 = scmp.ne.s32.totalorder %s872_s0, %s629_s19  ;;  %p633_p9 = scmp.lt.u32.totalorder %s629_s19, %s872_s0 }
  0x18   :  { %p635_p10 = pnand %p633_p9, %p630_p8 }
  0x1a   :  { %638 = shalt.err (!%p635_p10)
}
  0x1b   :  { %s639_s24 = scalar_lea.vmem %s772_s27, 256  ;;  %p644_p12 = scmp.lt.s32.totalorder %s772_s27, %s772_s27 }
  0x1c   :  { %p640_p11 = scmp.ne.s32.totalorder %s772_s27, %s639_s24  ;;  %p645_p13 = scmp.lt.s32.totalorder %s639_s24, %s639_s24 }
  0x1e   :  { %p646_p0 = por %p645_p13, %p644_p12 }
  0x20   :  { %p647_p1 = pnand %p646_p0, %p640_p11 }
  0x22   :  { %650 = shalt.err (!%p647_p1)
}
  0x23   :  { %27 = dma.hbm_to_vmem [thread:$0]  %s872_s0, 256, %s772_s27, [#allocation3], %s727_s13, %s727_s13, %s728_s14  }
  0x24   :  { %s729_s26 = smov [#allocation7]   ;;  %s730_s29 = smov [#allocation8]  }
  0x25   :  { %s47_s28 = sshll.u32 %s729_s26, 4  ;;  %s61_s30 = sshll.u32 %s730_s29, 4  ;;  %s48_s28 = int_to_ptr.vmem [resolvable:$true] %s47_s28  ;;  %s809_s30 = int_to_ptr.vmem [resolvable:$true] %s61_s30 }
  0x26   :  { %s651_s10 = scalar_lea.hbm %s875_s3, 2048 }
  0x27   :  { %p652_p2 = scmp.ne.s32.totalorder %s875_s3, %s651_s10  ;;  %p655_p3 = scmp.lt.u32.totalorder %s651_s10, %s875_s3 }
  0x29   :  { %p657_p4 = pnand %p655_p3, %p652_p2 }
  0x2b   :  { %660 = shalt.err (!%p657_p4)
}
  0x2c   :  { %s661_s0 = scalar_lea.vmem %s48_s28, 2048  ;;  %p666_p6 = scmp.lt.s32.totalorder %s48_s28, %s48_s28 }
  0x2d   :  { %p662_p5 = scmp.ne.s32.totalorder %s48_s28, %s661_s0  ;;  %p667_p7 = scmp.lt.s32.totalorder %s661_s0, %s661_s0 }
  0x2f   :  { %p668_p8 = por %p667_p7, %p666_p6 }
  0x31   :  { %p669_p9 = pnand %p668_p8, %p662_p5 }
  0x33   :  { %672 = shalt.err (!%p669_p9)
}
  0x34   :  { %53 = dma.hbm_to_vmem [thread:$0]  %s875_s3, 2048, %s48_s28, [#allocation6], %s727_s13, %s727_s13, %s728_s14  }
  0x35   :  { %s673_s20 = scalar_lea.hbm %s877_s5, 2048 }
  0x36   :  { %p674_p10 = scmp.ne.s32.totalorder %s877_s5, %s673_s20  ;;  %p677_p11 = scmp.lt.u32.totalorder %s673_s20, %s877_s5 }
  0x38   :  { %p679_p12 = pnand %p677_p11, %p674_p10 }
  0x3a   :  { %682 = shalt.err (!%p679_p12)
}
  0x3b   :  { %s683_s1 = scalar_lea.vmem %s809_s30, 2048  ;;  %p688_p0 = scmp.lt.s32.totalorder %s809_s30, %s809_s30 }
  0x3c   :  { %p684_p13 = scmp.ne.s32.totalorder %s809_s30, %s683_s1  ;;  %p689_p1 = scmp.lt.s32.totalorder %s683_s1, %s683_s1 }
  0x3e   :  { %p690_p2 = por %p689_p1, %p688_p0 }
  0x40   :  { %p691_p3 = pnand %p690_p2, %p684_p13 }
  0x42   :  { %694 = shalt.err (!%p691_p3)
}
  0x43   :  { %67 = dma.hbm_to_vmem [thread:$0]  %s877_s5, 2048, %s809_s30, [#allocation9], %s727_s13, %s727_s13, %s728_s14  }
  0x44   :  { %717 = dma.done.wait [#allocation3], 256  }
  0x45   :  { %718 = vsyncadd [#allocation3], 4294967040 }
  0x46   :  { %719 = dma.done.wait [#allocation6], 2560  }
  0x47   :  { %720 = vsyncadd [#allocation6], 4294964736 }
  0x48   :  { %721 = dma.done.wait [#allocation9], 2048  }
  0x49   :  { %722 = vsyncadd [#allocation9], 4294965248  ;;  %vm95_vm0 = vcmask 261120   ;;  %v84_v0 = vld [vmem:[#allocation5] sm:$0xff]  ;;  %v85_v1 = vld [vmem:[#allocation5 + $0x8] sm:$0xff]  ;;  %s731_s8 = smov [#allocation10]  }
  0x4a   :  { %v86_v2 = vld [vmem:[#allocation5 + $0x10] sm:$0xff]  ;;  %v528_v3 = vpack.c.bf16 %v85_v1, %v84_v0  ;;  %v87_v4 = vld [vmem:[#allocation5 + $0x18] sm:$0xff]  ;;  %v179_v7 = vld [vmem:[#allocation7] sm:$0xff]  ;;  %s386_s9 = sshll.u32 %s731_s8, 4  ;;  %s387_s9 = int_to_ptr.vmem [resolvable:$true] %s386_s9 }
  0x4b   :  { %v82_v5 = vld [vmem:[#allocation2] sm:$0xff]  ;;  %v532_v6 = vpack.c.bf16 %v87_v4, %v86_v2  ;;  %v180_v8 = vld [vmem:[#allocation7 + $0x8] sm:$0xff]  ;;  %v182_v11 = vld [vmem:[#allocation7 + $0x18] sm:$0xff]  ;;  %p700_p5 = scmp.lt.s32.totalorder %s387_s9, %s387_s9 }
  0x4c   :  { %455 = vmatprep.mubr.msk.f32.mxu0 %vm95_vm0, %v82_v5  ;;  %v181_v9 = vld [vmem:[#allocation7 + $0x10] sm:$0xff]  ;;  %529 = vmatprep.subr.bf16.mxu0 %v528_v3  ;;  %v536_v10 = vpack.c.bf16 %v180_v8, %v179_v7  ;;  %v183_v13 = vld [vmem:[#allocation7 + $0x20] sm:$0xff]  ;;  %v184_v14 = vld [vmem:[#allocation7 + $0x28] sm:$0xff] }
  0x4d   :  { %531 = vmatpush3.bf16.msra.mxu0 %v528_v3  ;;  %v540_v12 = vpack.c.bf16 %v182_v11, %v181_v9  ;;  %v544_v15 = vpack.c.bf16 %v184_v14, %v183_v13  ;;  %v83_v16 = vld [vmem:[#allocation2 + $0x8] sm:$0xff]  ;;  %v185_v17 = vld [vmem:[#allocation7 + $0x30] sm:$0xff]  ;;  %v187_v20 = vld [vmem:[#allocation7 + $0x40] sm:$0xff] }
  0x4e   :  { %533 = vmatprep.subr.bf16.mxu0 %v532_v6  ;;  %537 = vmatprep.subr.bf16.mxu1 %v536_v10  ;;  %v186_v18 = vld [vmem:[#allocation7 + $0x38] sm:$0xff]  ;;  %v188_v21 = vld [vmem:[#allocation7 + $0x48] sm:$0xff]  ;;  %v189_v23 = vld [vmem:[#allocation7 + $0x50] sm:$0xff] }
  0x4f   :  { %539 = vmatpush3.bf16.msra.mxu1 %v536_v10  ;;  %v548_v19 = vpack.c.bf16 %v186_v18, %v185_v17  ;;  %v552_v22 = vpack.c.bf16 %v188_v21, %v187_v20  ;;  %v190_v24 = vld [vmem:[#allocation7 + $0x58] sm:$0xff]  ;;  %v191_v26 = vld [vmem:[#allocation7 + $0x60] sm:$0xff]  ;;  %v192_v27 = vld [vmem:[#allocation7 + $0x68] sm:$0xff] }
  0x50   :  { %541 = vmatprep.subr.bf16.mxu1 %v540_v12  ;;  %v556_v25 = vpack.c.bf16 %v190_v24, %v189_v23  ;;  %v560_v28 = vpack.c.bf16 %v192_v27, %v191_v26  ;;  %v193_v29 = vld [vmem:[#allocation7 + $0x70] sm:$0xff]  ;;  %v194_v30 = vld [vmem:[#allocation7 + $0x78] sm:$0xff]  ;;  %v279_v32 = vld [vmem:[#allocation8] sm:$0xff] }
  0x51   :  { %535 = vmatpush3.bf16.msra.mxu0 %v532_v6  ;;  %v564_v31 = vpack.c.bf16 %v194_v30, %v193_v29  ;;  %v280_v33 = vld [vmem:[#allocation8 + $0x8] sm:$0xff]  ;;  %v281_v34 = vld [vmem:[#allocation8 + $0x10] sm:$0xff]  ;;  %v282_v36 = vld [vmem:[#allocation8 + $0x18] sm:$0xff] }
  0x52   :  { %v568_v35 = vpack.c.bf16 %v280_v33, %v279_v32  ;;  %v572_v37 = vpack.c.bf16 %v282_v36, %v281_v34  ;;  %v283_v38 = vld [vmem:[#allocation8 + $0x20] sm:$0xff]  ;;  %v284_v39 = vld [vmem:[#allocation8 + $0x28] sm:$0xff]  ;;  %v285_v41 = vld [vmem:[#allocation8 + $0x30] sm:$0xff] }
  0x53   :  { %543 = vmatpush3.bf16.msra.mxu1 %v540_v12  ;;  %v576_v40 = vpack.c.bf16 %v284_v39, %v283_v38  ;;  %v286_v42 = vld [vmem:[#allocation8 + $0x38] sm:$0xff]  ;;  %v287_v44 = vld [vmem:[#allocation8 + $0x40] sm:$0xff]  ;;  %v288_v45 = vld [vmem:[#allocation8 + $0x48] sm:$0xff] }
  0x54   :  { %456 = vmatmul.mubr.msk.f32.vlgmr.msra.gmra.mrb[0].mxu0 %vm95_vm0, %v83_v16  ;;  %545 = vmatprep.subr.bf16.mxu1 %v544_v15  ;;  %v580_v43 = vpack.c.bf16 %v286_v42, %v285_v41  ;;  %v584_v46 = vpack.c.bf16 %v288_v45, %v287_v44  ;;  %v289_v47 = vld [vmem:[#allocation8 + $0x50] sm:$0xff]  ;;  %v290_v48 = vld [vmem:[#allocation8 + $0x58] sm:$0xff]  ;;  %v291_v50 = vld [vmem:[#allocation8 + $0x60] sm:$0xff] }
  0x55   :  { %569 = vmatprep.subr.bf16.mxu0 %v568_v35  ;;  %v588_v49 = vpack.c.bf16 %v290_v48, %v289_v47  ;;  %v292_v51 = vld [vmem:[#allocation8 + $0x68] sm:$0xff]  ;;  %v400_v53 = vld [vmem:[%s874_s2] ss:$0 sm:$0xff]  ;;  %v294_v61 = vld [vmem:[#allocation8 + $0x78] sm:$0xff] }
  0x56   :  { %571 = vmatpush3.bf16.msra.mxu0 %v568_v35  ;;  %v592_v52 = vpack.c.bf16 %v292_v51, %v291_v50  ;;  %v293_v60 = vld [vmem:[#allocation8 + $0x70] sm:$0xff] }
  0x57   :  { %547 = vmatpush3.bf16.msra.mxu1 %v544_v15  ;;  %573 = vmatprep.subr.bf16.mxu0 %v572_v37  ;;  %v596_v62 = vpack.c.bf16 %v294_v61, %v293_v60  ;;  %v403_v63 = vld [vmem:[%s876_s4] ss:$0 sm:$0xff]  ;;  %s695_s4 = scalar_lea.vmem %s387_s9, 256 }
  0x58   :  { %549 = vmatprep.subr.bf16.mxu1 %v548_v19  ;;  %v404_v6 = vld [vmem:[%s878_s6] ss:$0 sm:$0xff]  ;;  %p696_p4 = scmp.ne.s32.totalorder %s387_s9, %s695_s4  ;;  %p701_p6 = scmp.lt.s32.totalorder %s695_s4, %s695_s4 }
  0x5a   :  { %575 = vmatpush3.bf16.msra.mxu0 %v572_v37  ;;  %p702_p7 = por %p701_p6, %p700_p5 }
  0x5b   :  { %551 = vmatpush3.bf16.msra.mxu1 %v548_v19  ;;  %577 = vmatprep.subr.bf16.mxu0 %v576_v40 }
  0x5c   :  { %553 = vmatprep.subr.bf16.mxu1 %v552_v22  ;;  %p703_p8 = pnand %p702_p7, %p696_p4 }
  0x5e   :  { %579 = vmatpush3.bf16.msra.mxu0 %v576_v40 }
  0x5f   :  { %555 = vmatpush3.bf16.msra.mxu1 %v552_v22  ;;  %581 = vmatprep.subr.bf16.mxu0 %v580_v43 }
  0x60   :  { %557 = vmatprep.subr.bf16.mxu1 %v556_v25 }
  0x62   :  { %583 = vmatpush3.bf16.msra.mxu0 %v580_v43 }
  0x63   :  { %559 = vmatpush3.bf16.msra.mxu1 %v556_v25  ;;  %585 = vmatprep.subr.bf16.mxu0 %v584_v46 }
  0x64   :  { %561 = vmatprep.subr.bf16.mxu1 %v560_v28 }
  0x66   :  { %587 = vmatpush3.bf16.msra.mxu0 %v584_v46 }
  0x67   :  { %563 = vmatpush3.bf16.msra.mxu1 %v560_v28  ;;  %589 = vmatprep.subr.bf16.mxu0 %v588_v49 }
  0x68   :  { %565 = vmatprep.subr.bf16.mxu1 %v564_v31 }
  0x6a   :  { %591 = vmatpush3.bf16.msra.mxu0 %v588_v49 }
  0x6b   :  { %567 = vmatpush3.bf16.msra.mxu1 %v564_v31  ;;  %593 = vmatprep.subr.bf16.mxu0 %v592_v52 }
  0x6e   :  { %595 = vmatpush3.bf16.msra.mxu0 %v592_v52 }
  0x6f   :  { %597 = vmatprep.subr.bf16.mxu0 %v596_v62 }
  0x72   :  { %599 = vmatpush3.bf16.msra.mxu0 %v596_v62 }
 0x127   :  { %v457_v54 = vpop.f32.mrb[0].mxu0 }
 0x128   :  { %v174_v55 = vadd.f32 %v457_v54, %v400_v53  ;;  %v168_v56 = vpop.f32.mrb[1].mxu0 }
 0x129   :  { %v169_v57 = vadd.f32 %v400_v53, %v168_v56 }
 0x12a   :  { %v178_v59 = vmax.f32 %v174_v55, 0.0 }
 0x12b   :  { %v177_v58 = vmax.f32 %v169_v57, 0.0 }
 0x12d   :  { %490 = vmatprep.mubr.f32.mxu1 %v177_v58 }
 0x12e   :  { %491 = vmatmul.mubr.f32.vlgmr.msra.gmra.mrb[0].mxu1 %v178_v59 }
 0x201   :  { %v492_v0 = vpop.f32.mrb[0].mxu1 }
 0x202   :  { %v274_v1 = vadd.f32 %v492_v0, %v403_v63  ;;  %v268_v2 = vpop.f32.mrb[1].mxu1 }
 0x203   :  { %v269_v3 = vadd.f32 %v403_v63, %v268_v2 }
 0x204   :  { %v278_v5 = vmax.f32 %v274_v1, 0.0 }
 0x205   :  { %v277_v4 = vmax.f32 %v269_v3, 0.0 }
 0x207   :  { %525 = vmatprep.mubr.f32.mxu0 %v277_v4 }
 0x208   :  { %526 = vmatmul.mubr.f32.vlgmr.msra.gmra.mrb[2].mxu0 %v278_v5 }
 0x2db   :  { %v527_v7 = vpop.f32.mrb[2].mxu0 }
 0x2dc   :  { %v374_v8 = vadd.f32 %v527_v7, %v404_v6  ;;  %v368_v9 = vpop.f32.mrb[3].mxu0 }
 0x2dd   :  { %v369_v10 = vadd.f32 %v404_v6, %v368_v9 }
 0x2de   :  { %v378_v11 = vmax.f32 %v374_v8, 0.0 }
 0x2df   :  { %v377_v12 = vmax.f32 %v369_v10, 0.0 }
 0x2e0   :  { %380 = vst [vmem:[#allocation10 + $0x8] sm:$0xff] %v378_v11 }
 0x2e1   :  { %379 = vst [vmem:[#allocation10] sm:$0xff] %v377_v12 }
 0x2e2   :  { %706 = shalt.err (!%p703_p8)
}
 0x2e3   :  { %s707_s11 = scalar_lea.hbm %s879_s7, 256 }
 0x2e4   :  { %p708_p9 = scmp.ne.s32.totalorder %s879_s7, %s707_s11  ;;  %p711_p10 = scmp.lt.u32.totalorder %s707_s11, %s879_s7 }
 0x2e6   :  { %p713_p11 = pnand %p711_p10, %p708_p9 }
 0x2e8   :  { %716 = shalt.err (!%p713_p11)
}
 0x2e9   :  { %392 = dma.vmem_to_hbm [thread:$0]  %s387_s9, 256, %s879_s7, [#allocation4], %s727_s13, %s727_s13, %s728_s14  }
 0x2ea   :  { %723 = dma.done.wait [#allocation4], 256  }
 0x2eb   :  { %724 = vsyncadd [#allocation4], 4294967040 }
 0x2ec   :  { %396 = vsyncpa [#allocation3], 1 }
 0x2ed   :  { %397 = vsyncpa [#allocation6], 1 }
 0x2ee   :  { %398 = vsyncpa [#allocation9], 1 }
 0x2ef   :  { %399 = vsyncpa [#allocation4], 1 }

</bundles_post_ra>
